<compile_context>
chip_gen: v5e
topology: v5e:2x2
jax: 0.10.0
libtpu: 0.0.40
codegen_flags: <defaults>
</compile_context>

<pallas_src>
import functools

import jax
import jax.numpy as jnp
from jax.experimental import pallas as pl
from jax.experimental.pallas import tpu as pltpu

D_MODEL = 116
D_FF = 116
D_PAD = 128          # lane-dense padded feature width
LN_EPS = 1e-5


def _round_up(n, m):
    return ((n + m - 1) // m) * m


def _ffn_ln_kernel(x_ref, w1_ref, b1_ref, w2_ref, b2_ref, g_ref, beta_ref, o_ref,
                   *, matmul_dtype):
    x = x_ref[...].astype(jnp.float32)                       # (TM, 128), pad lanes are 0

    # conv1 (kernel_size=1) == dense over channels, then ReLU.
    h = jnp.dot(x.astype(matmul_dtype), w1_ref[...],
                preferred_element_type=jnp.float32) + b1_ref[...]
    h = jnp.maximum(h, 0.0)                                   # (TM, 128), pad lanes 0

    # conv2 (kernel_size=1) == dense over channels, plus residual.
    y = jnp.dot(h.astype(matmul_dtype), w2_ref[...],
                preferred_element_type=jnp.float32) + b2_ref[...]
    y = y + x                                                 # (TM, 128), pad lanes 0

    # LayerNorm over the 116 real lanes.  Padded lanes of y are exactly zero
    # by construction (zero-padded x / W / b), so lane sums over 128 equal the
    # sums over the 116 real lanes; divisor stays 1/116 and the centered
    # values are masked before the variance sum (padded lanes would otherwise
    # contribute mean^2 each).
    inv_n = jnp.float32(1.0 / D_MODEL)
    mean = jnp.sum(y, axis=-1, keepdims=True) * inv_n
    yc = y - mean
    lane = jax.lax.broadcasted_iota(jnp.int32, yc.shape, dimension=1)
    yc_valid = jnp.where(lane < D_MODEL, yc, 0.0)
    var = jnp.sum(yc_valid * yc_valid, axis=-1, keepdims=True) * inv_n
    inv = jax.lax.rsqrt(var + LN_EPS)

    # gamma/beta are zero in the padded lanes, so output pad lanes stay zero.
    o_ref[...] = (yc * inv * g_ref[...] + beta_ref[...]).astype(o_ref.dtype)


def poswise_ffn(x, w1, b1, w2, b2, gamma, beta, *, tm=1024,
                matmul_dtype=jnp.float32):
    """x: (B, S, d_model) float32. w1: (d_model, d_ff), w2: (d_ff, d_model).

    Returns (B, S, d_model). `matmul_dtype=jnp.bfloat16` enables bf16 MXU
    operands (f32 accumulation) for v6e/v7x.
    """
    B, S, D = x.shape
    assert D == D_MODEL
    rows = B * S

    # Row tile: large for HBM-pipeline efficiency, but never bigger than needed
    # for tiny inputs; always a multiple of 8 (sublane granularity).
    tm = max(8, min(tm, _round_up(rows, 8)))
    rows_pad = _round_up(rows, tm)

    fpad_m = D_PAD - D_MODEL
    fpad_f = D_PAD - D_FF

    x2 = jnp.pad(x.reshape(rows, D), ((0, rows_pad - rows), (0, fpad_m)))
    w1p = jnp.pad(w1, ((0, fpad_m), (0, fpad_f))).astype(matmul_dtype)
    w2p = jnp.pad(w2, ((0, fpad_f), (0, fpad_m))).astype(matmul_dtype)
    b1p = jnp.pad(b1, (0, fpad_f)).reshape(1, D_PAD)
    b2p = jnp.pad(b2, (0, fpad_m)).reshape(1, D_PAD)
    g_p = jnp.pad(gamma, (0, fpad_m)).reshape(1, D_PAD)
    be_p = jnp.pad(beta, (0, fpad_m)).reshape(1, D_PAD)

    kernel = functools.partial(_ffn_ln_kernel, matmul_dtype=matmul_dtype)

    out2 = pl.pallas_call(
        kernel,
        out_shape=jax.ShapeDtypeStruct((rows_pad, D_PAD), x.dtype),
        grid_spec=pltpu.PrefetchScalarGridSpec(
            num_scalar_prefetch=0,
            grid=(rows_pad // tm,),
            in_specs=[
                pl.BlockSpec((tm, D_PAD), lambda i: (i, 0)),        # x rows tile
                pl.BlockSpec((D_PAD, D_PAD), lambda i: (0, 0)),     # W1 (resident)
                pl.BlockSpec((1, D_PAD), lambda i: (0, 0)),         # b1
                pl.BlockSpec((D_PAD, D_PAD), lambda i: (0, 0)),     # W2 (resident)
                pl.BlockSpec((1, D_PAD), lambda i: (0, 0)),         # b2
                pl.BlockSpec((1, D_PAD), lambda i: (0, 0)),         # gamma
                pl.BlockSpec((1, D_PAD), lambda i: (0, 0)),         # beta
            ],
            out_specs=pl.BlockSpec((tm, D_PAD), lambda i: (i, 0)),
        ),
        compiler_params=pltpu.CompilerParams(
            dimension_semantics=("parallel",),
        ),
    )(x2, w1p, b1p, w2p, b2p, g_p, be_p)

    return out2[:rows, :D_MODEL].reshape(B, S, D)


def _init_params(key):
    # Deterministic synthetic params matching nn.Conv1d / nn.LayerNorm shapes.
    k1, k2, k3, k4 = jax.random.split(key, 4)
    bound1 = 1.0 / (D_MODEL ** 0.5)
    bound2 = 1.0 / (D_FF ** 0.5)
    # Conv1d weight is (out, in, 1); we keep (in, out) so the kernel does x @ W.
    w1 = jax.random.uniform(k1, (D_MODEL, D_FF), jnp.float32, -bound1, bound1)
    b1 = jax.random.uniform(k2, (D_FF,), jnp.float32, -bound1, bound1)
    w2 = jax.random.uniform(k3, (D_FF, D_MODEL), jnp.float32, -bound2, bound2)
    b2 = jax.random.uniform(k4, (D_MODEL,), jnp.float32, -bound2, bound2)
    gamma = jnp.ones((D_MODEL,), jnp.float32)
    beta = jnp.zeros((D_MODEL,), jnp.float32)
    return w1, b1, w2, b2, gamma, beta


def _reference(x, w1, b1, w2, b2, gamma, beta):
    h = jnp.maximum(x @ w1 + b1, 0.0)
    y = h @ w2 + b2 + x
    mean = jnp.mean(y, axis=-1, keepdims=True)
    var = jnp.mean((y - mean) ** 2, axis=-1, keepdims=True)
    return (y - mean) * jax.lax.rsqrt(var + LN_EPS) * gamma + beta


if __name__ == "__main__":
    key = jax.random.PRNGKey(0)
    kx, kp, kx2 = jax.random.split(key, 3)
    params = _init_params(kp)

    # Small shape matching the module's forward: (batch, seq, d_model).
    B, S = 2, 8
    x = jax.random.normal(kx, (B, S, D_MODEL), jnp.float32)
    out = jax.block_until_ready(poswise_ffn(x, *params))
    ref = _reference(x, *params)
    assert out.shape == (B, S, D_MODEL)
    assert jnp.allclose(out, ref, atol=1e-4, rtol=1e-4)

    # Second check: row count not divisible by the tile -> exercises row padding
    # and a multi-step grid (tm=64 forces 2 grid steps here).
    B2, S2 = 3, 37
    x2 = jax.random.normal(kx2, (B2, S2, D_MODEL), jnp.float32)
    out2 = jax.block_until_ready(poswise_ffn(x2, *params, tm=64))
    ref2 = _reference(x2, *params)
    assert out2.shape == (B2, S2, D_MODEL)
    assert jnp.allclose(out2, ref2, atol=1e-4, rtol=1e-4)

    print("KERNEL_OK")
</pallas_src>

<mosaic_0001>
module attributes {stable_mosaic.version = 11 : i64} {
  func.func @_ffn_ln_kernel(%arg0: i32, %arg1: memref<16x128xf32, #tpu.memory_space<vmem>>, %arg2: memref<128x128xf32, #tpu.memory_space<vmem>>, %arg3: memref<1x128xf32, #tpu.memory_space<vmem>>, %arg4: memref<128x128xf32, #tpu.memory_space<vmem>>, %arg5: memref<1x128xf32, #tpu.memory_space<vmem>>, %arg6: memref<1x128xf32, #tpu.memory_space<vmem>>, %arg7: memref<1x128xf32, #tpu.memory_space<vmem>>, %arg8: memref<16x128xf32, #tpu.memory_space<vmem>>) attributes {dimension_semantics = [#tpu.dimension_semantics<parallel>], iteration_bounds = array<i64: 1>, scalar_prefetch = 0 : i64, scratch_operands = 0 : i64, tpu.core_type = #tpu.core_type<tc>, window_params = [{transform_indices = @transform_0, window_bounds = array<i64: 16, 128>}, {pipeline_mode = #tpu.pipeline_mode<synchronous>, transform_indices = @transform_1, window_bounds = array<i64: 128, 128>}, {pipeline_mode = #tpu.pipeline_mode<synchronous>, transform_indices = @transform_2, window_bounds = array<i64: 1, 128>}, {pipeline_mode = #tpu.pipeline_mode<synchronous>, transform_indices = @transform_3, window_bounds = array<i64: 128, 128>}, {pipeline_mode = #tpu.pipeline_mode<synchronous>, transform_indices = @transform_4, window_bounds = array<i64: 1, 128>}, {pipeline_mode = #tpu.pipeline_mode<synchronous>, transform_indices = @transform_5, window_bounds = array<i64: 1, 128>}, {pipeline_mode = #tpu.pipeline_mode<synchronous>, transform_indices = @transform_6, window_bounds = array<i64: 1, 128>}, {transform_indices = @transform_7, window_bounds = array<i64: 16, 128>}]} {
    %c0 = arith.constant 0 : index
    %c0_0 = arith.constant 0 : index
    %0 = vector.load %arg1[%c0, %c0_0] : memref<16x128xf32, #tpu.memory_space<vmem>>, vector<16x128xf32>
    %c0_1 = arith.constant 0 : index
    %c0_2 = arith.constant 0 : index
    %1 = vector.load %arg2[%c0_1, %c0_2] : memref<128x128xf32, #tpu.memory_space<vmem>>, vector<128x128xf32>
    %cst = arith.constant dense<0.000000e+00> : vector<16x128xf32>
    %2 = tpu.matmul %0, %1, %cst {dimension_numbers = #tpu.dot_dimension_numbers<[1], [0], [0], [1], [0, 0, 1, 1], [], []>} : vector<16x128xf32>, vector<128x128xf32>, vector<16x128xf32> -> vector<16x128xf32>
    %c0_3 = arith.constant 0 : index
    %c0_4 = arith.constant 0 : index
    %3 = vector.load %arg3[%c0_3, %c0_4] : memref<1x128xf32, #tpu.memory_space<vmem>>, vector<1x128xf32>
    %4 = vector.broadcast %3 : vector<1x128xf32> to vector<16x128xf32>
    %5 = arith.addf %2, %4 : vector<16x128xf32>
    %cst_5 = arith.constant 0.000000e+00 : f32
    %6 = vector.broadcast %cst_5 : f32 to vector<16x128xf32>
    %7 = arith.maximumf %5, %6 : vector<16x128xf32>
    %c0_6 = arith.constant 0 : index
    %c0_7 = arith.constant 0 : index
    %8 = vector.load %arg4[%c0_6, %c0_7] : memref<128x128xf32, #tpu.memory_space<vmem>>, vector<128x128xf32>
    %cst_8 = arith.constant dense<0.000000e+00> : vector<16x128xf32>
    %9 = tpu.matmul %7, %8, %cst_8 {dimension_numbers = #tpu.dot_dimension_numbers<[1], [0], [0], [1], [0, 0, 1, 1], [], []>} : vector<16x128xf32>, vector<128x128xf32>, vector<16x128xf32> -> vector<16x128xf32>
    %c0_9 = arith.constant 0 : index
    %c0_10 = arith.constant 0 : index
    %10 = vector.load %arg5[%c0_9, %c0_10] : memref<1x128xf32, #tpu.memory_space<vmem>>, vector<1x128xf32>
    %11 = vector.broadcast %10 : vector<1x128xf32> to vector<16x128xf32>
    %12 = arith.addf %9, %11 : vector<16x128xf32>
    %13 = arith.addf %12, %0 : vector<16x128xf32>
    %cst_11 = arith.constant dense<0.000000e+00> : vector<16xf32>
    %14 = vector.multi_reduction <add>, %13, %cst_11 [1] : vector<16x128xf32> to vector<16xf32>
    %15 = vector.shape_cast %14 : vector<16xf32> to vector<16x1xf32>
    %cst_12 = arith.constant 8.620690e-03 : f32
    %16 = vector.broadcast %cst_12 : f32 to vector<16x1xf32>
    %17 = arith.mulf %15, %16 : vector<16x1xf32>
    %18 = vector.broadcast %17 : vector<16x1xf32> to vector<16x128xf32>
    %19 = arith.subf %13, %18 : vector<16x128xf32>
    %20 = tpu.iota {dimensions = array<i32: 1>} : vector<16x128xi32>
    %c116_i32 = arith.constant 116 : i32
    %21 = vector.broadcast %c116_i32 : i32 to vector<16x128xi32>
    %22 = arith.cmpi slt, %20, %21 : vector<16x128xi32>
    %cst_13 = arith.constant 0.000000e+00 : f32
    %23 = vector.broadcast %cst_13 : f32 to vector<16x128xf32>
    %24 = arith.select %22, %19, %23 : vector<16x128xi1>, vector<16x128xf32>
    %25 = arith.mulf %24, %24 : vector<16x128xf32>
    %cst_14 = arith.constant dense<0.000000e+00> : vector<16xf32>
    %26 = vector.multi_reduction <add>, %25, %cst_14 [1] : vector<16x128xf32> to vector<16xf32>
    %27 = vector.shape_cast %26 : vector<16xf32> to vector<16x1xf32>
    %cst_15 = arith.constant 8.620690e-03 : f32
    %28 = vector.broadcast %cst_15 : f32 to vector<16x1xf32>
    %29 = arith.mulf %27, %28 : vector<16x1xf32>
    %cst_16 = arith.constant 9.99999974E-6 : f32
    %30 = vector.broadcast %cst_16 : f32 to vector<16x1xf32>
    %31 = arith.addf %29, %30 : vector<16x1xf32>
    %32 = math.rsqrt %31 : vector<16x1xf32>
    %33 = vector.broadcast %32 : vector<16x1xf32> to vector<16x128xf32>
    %34 = arith.mulf %19, %33 : vector<16x128xf32>
    %c0_17 = arith.constant 0 : index
    %c0_18 = arith.constant 0 : index
    %35 = vector.load %arg6[%c0_17, %c0_18] : memref<1x128xf32, #tpu.memory_space<vmem>>, vector<1x128xf32>
    %36 = vector.broadcast %35 : vector<1x128xf32> to vector<16x128xf32>
    %37 = arith.mulf %34, %36 : vector<16x128xf32>
    %c0_19 = arith.constant 0 : index
    %c0_20 = arith.constant 0 : index
    %38 = vector.load %arg7[%c0_19, %c0_20] : memref<1x128xf32, #tpu.memory_space<vmem>>, vector<1x128xf32>
    %39 = vector.broadcast %38 : vector<1x128xf32> to vector<16x128xf32>
    %40 = arith.addf %37, %39 : vector<16x128xf32>
    %c0_21 = arith.constant 0 : index
    %c0_22 = arith.constant 0 : index
    %41 = vector.load %arg8[%c0_21, %c0_22] : memref<16x128xf32, #tpu.memory_space<vmem>>, vector<16x128xf32>
    tpu.vector_store %arg8[%c0_21, %c0_22], %40 {strides = array<i32>} : memref<16x128xf32, #tpu.memory_space<vmem>>, vector<16x128xf32>,
    return
  }
  func.func @transform_0(%arg0: i32) -> (i32, i32) {
    %c0_i32 = arith.constant 0 : i32
    %c0_i32_0 = arith.constant 0 : i32
    return %arg0, %c0_i32 : i32, i32
  }
  func.func @transform_1(%arg0: i32) -> (i32, i32) {
    %c0_i32 = arith.constant 0 : i32
    %c0_i32_0 = arith.constant 0 : i32
    %c0_i32_1 = arith.constant 0 : i32
    return %c0_i32, %c0_i32_0 : i32, i32
  }
  func.func @transform_2(%arg0: i32) -> (i32, i32) {
    %c0_i32 = arith.constant 0 : i32
    %c0_i32_0 = arith.constant 0 : i32
    %c0_i32_1 = arith.constant 0 : i32
    return %c0_i32, %c0_i32_0 : i32, i32
  }
  func.func @transform_3(%arg0: i32) -> (i32, i32) {
    %c0_i32 = arith.constant 0 : i32
    %c0_i32_0 = arith.constant 0 : i32
    %c0_i32_1 = arith.constant 0 : i32
    return %c0_i32, %c0_i32_0 : i32, i32
  }
  func.func @transform_4(%arg0: i32) -> (i32, i32) {
    %c0_i32 = arith.constant 0 : i32
    %c0_i32_0 = arith.constant 0 : i32
    %c0_i32_1 = arith.constant 0 : i32
    return %c0_i32, %c0_i32_0 : i32, i32
  }
  func.func @transform_5(%arg0: i32) -> (i32, i32) {
    %c0_i32 = arith.constant 0 : i32
    %c0_i32_0 = arith.constant 0 : i32
    %c0_i32_1 = arith.constant 0 : i32
    return %c0_i32, %c0_i32_0 : i32, i32
  }
  func.func @transform_6(%arg0: i32) -> (i32, i32) {
    %c0_i32 = arith.constant 0 : i32
    %c0_i32_0 = arith.constant 0 : i32
    %c0_i32_1 = arith.constant 0 : i32
    return %c0_i32, %c0_i32_0 : i32, i32
  }
  func.func @transform_7(%arg0: i32) -> (i32, i32) {
    %c0_i32 = arith.constant 0 : i32
    %c0_i32_0 = arith.constant 0 : i32
    return %arg0, %c0_i32 : i32, i32
  }
}

</mosaic_0001>

<bundles_post_ra>
// kernel: tpu_custom_call.1
= control target key start
LH: loop header
LB: loop body
LE: loop exit
PB: predicated region body
PF: predicated region fallthrough
CT: control target
= control target key end

     0   :  { %12 = vsyncpa [#allocation3], 0  ;;  %s475_s0 = inlined_call_operand.hbm [shape: f32[16,128], index: 0, kind: input, shape index: {}]   ;;  %s476_s1 = inlined_call_operand.hbm [shape: f32[128,128], index: 1, kind: input, shape index: {}]   ;;  %s477_s2 = inlined_call_operand.vmem [shape: f32[1,128], index: 2, kind: input, shape index: {}]   ;;  %s478_s3 = inlined_call_operand.hbm [shape: f32[128,128], index: 3, kind: input, shape index: {}]   ;;  %s479_s4 = inlined_call_operand.vmem [shape: f32[1,128], index: 4, kind: input, shape index: {}]   ;;  %s480_s5 = inlined_call_operand.vmem [shape: f32[1,128], index: 5, kind: input, shape index: {}]   ;;  %s481_s6 = inlined_call_operand.vmem [shape: f32[1,128], index: 6, kind: input, shape index: {}]   ;;  %s482_s7 = inlined_call_operand.hbm [shape: f32[16,128], index: 7, kind: output, shape index: {}]  }
   0x1   :  { %13 = vsyncpa [#allocation6], 0 }
   0x2   :  { %14 = vsyncpa [#allocation4], 0  ;;  %s32_s26 = sshll.u32 %s476_s1, 4  ;;  %s393_s27 = smov [#allocation5]   ;;  %s33_s26 = int_to_ptr.hbm [resolvable:$true] %s32_s26 }
   0x3   :  { %s34_s28 = sshll.u32 %s393_s27, 4  ;;  %s19_s8 = sshll.u32 %s475_s0, 4  ;;  %s35_s28 = int_to_ptr.vmem [resolvable:$true] %s34_s28  ;;  %s20_s8 = int_to_ptr.hbm [resolvable:$true] %s19_s8 }
   0x4   :  { %s394_s9 = smov 128   ;;  %s395_s10 = smov 8  }
   0x5   :  { %40 = dma.hbm_to_vmem [thread:$0]  %s33_s26, 2048, %s35_s28, [#allocation6], %s394_s9, %s394_s9, %s395_s10  }
   0x6   :  { %s396_s11 = smov [#allocation2]   ;;  %s47_s1 = sshll.u32 %s478_s3, 4  ;;  %s48_s1 = int_to_ptr.hbm [resolvable:$true] %s47_s1 }
   0x7   :  { %s21_s12 = sshll.u32 %s396_s11, 4  ;;  %s397_s0 = smov [#allocation7]   ;;  %s22_s12 = int_to_ptr.vmem [resolvable:$true] %s21_s12 }
   0x8   :  { %27 = dma.hbm_to_vmem [thread:$0]  %s20_s8, 256, %s22_s12, [#allocation3], %s394_s9, %s394_s9, %s395_s10  }
   0x9   :  { %s49_s15 = sshll.u32 %s397_s0, 4  ;;  %s50_s15 = int_to_ptr.vmem [resolvable:$true] %s49_s15 }
   0xa   :  { %55 = dma.hbm_to_vmem [thread:$0]  %s48_s1, 2048, %s50_s15, [#allocation6], %s394_s9, %s394_s9, %s395_s10  }
   0xb   :  { %387 = dma.done.wait [#allocation3], 256  }
   0xc   :  { %388 = vsyncadd [#allocation3], 4294967040 }
   0xd   :  { %389 = dma.done.wait [#allocation6], 4096  }
   0xe   :  { %390 = vsyncadd [#allocation6], 4294963200  ;;  %v91_v0 = vld [vmem:[#allocation5 + $0x78] sm:$0xff]  ;;  %v90_v1 = vld [vmem:[#allocation5 + $0x70] sm:$0xff]  ;;  %v174_v48 = vlaneseq  ;;  %s231_s24 = sshll.u32 %s482_s7, 4  ;;  %s232_s24 = int_to_ptr.hbm [resolvable:$true] %s231_s24 }
   0xf   :  { %96 = vmatpush.msra.mxu0 %v91_v0  ;;  %245 = vmatpush.msra.mxu2 %v91_v0  ;;  %v89_v2 = vld [vmem:[#allocation5 + $0x68] sm:$0xff]  ;;  %v88_v3 = vld [vmem:[#allocation5 + $0x60] sm:$0xff]  ;;  %v87_v4 = vld [vmem:[#allocation5 + $0x58] sm:$0xff] }
  0x10   :  { %v136_v5 = vld [vmem:[#allocation7 + $0x78] sm:$0xff]  ;;  %v135_v6 = vld [vmem:[#allocation7 + $0x70] sm:$0xff]  ;;  %v134_v8 = vld [vmem:[#allocation7 + $0x68] sm:$0xff]  ;;  %v175_v49 = vand.u32 127, %v174_v48 }
  0x11   :  { %97 = vmatpush.msra.mxu0 %v90_v1  ;;  %246 = vmatpush.msra.mxu2 %v90_v1  ;;  %v86_v7 = vld [vmem:[#allocation5 + $0x50] sm:$0xff]  ;;  %v85_v9 = vld [vmem:[#allocation5 + $0x48] sm:$0xff]  ;;  %v133_v10 = vld [vmem:[#allocation7 + $0x60] sm:$0xff] }
  0x12   :  { %141 = vmatpush.msra.mxu1 %v136_v5  ;;  %261 = vmatpush.msra.mxu3 %v136_v5  ;;  %v84_v11 = vld [vmem:[#allocation5 + $0x40] sm:$0xff]  ;;  %v132_v12 = vld [vmem:[#allocation7 + $0x58] sm:$0xff]  ;;  %v131_v14 = vld [vmem:[#allocation7 + $0x50] sm:$0xff]  ;;  %vm176_vm0 = vcmp.lt.s32.totalorder %v175_v49, 116 }
  0x13   :  { %98 = vmatpush.msra.mxu0 %v89_v2  ;;  %247 = vmatpush.msra.mxu2 %v89_v2  ;;  %v83_v13 = vld [vmem:[#allocation5 + $0x38] sm:$0xff]  ;;  %v82_v15 = vld [vmem:[#allocation5 + $0x30] sm:$0xff]  ;;  %v130_v16 = vld [vmem:[#allocation7 + $0x48] sm:$0xff] }
  0x14   :  { %142 = vmatpush.msra.mxu1 %v135_v6  ;;  %262 = vmatpush.msra.mxu3 %v135_v6  ;;  %v81_v17 = vld [vmem:[#allocation5 + $0x28] sm:$0xff]  ;;  %v129_v18 = vld [vmem:[#allocation7 + $0x40] sm:$0xff]  ;;  %v128_v20 = vld [vmem:[#allocation7 + $0x38] sm:$0xff] }
  0x15   :  { %99 = vmatpush.msra.mxu0 %v88_v3  ;;  %248 = vmatpush.msra.mxu2 %v88_v3  ;;  %v80_v19 = vld [vmem:[#allocation5 + $0x20] sm:$0xff]  ;;  %v79_v21 = vld [vmem:[#allocation5 + $0x18] sm:$0xff]  ;;  %v127_v22 = vld [vmem:[#allocation7 + $0x30] sm:$0xff] }
  0x16   :  { %143 = vmatpush.msra.mxu1 %v134_v8  ;;  %263 = vmatpush.msra.mxu3 %v134_v8  ;;  %v78_v23 = vld [vmem:[#allocation5 + $0x10] sm:$0xff]  ;;  %v126_v24 = vld [vmem:[#allocation7 + $0x28] sm:$0xff]  ;;  %v125_v26 = vld [vmem:[#allocation7 + $0x20] sm:$0xff] }
  0x17   :  { %100 = vmatpush.msra.mxu0 %v87_v4  ;;  %249 = vmatpush.msra.mxu2 %v87_v4  ;;  %v77_v25 = vld [vmem:[#allocation5 + $0x8] sm:$0xff]  ;;  %v76_v27 = vld [vmem:[#allocation5] sm:$0xff]  ;;  %v74_v28 = vld [vmem:[#allocation2] sm:$0xff] }
  0x18   :  { %144 = vmatpush.msra.mxu1 %v133_v10  ;;  %264 = vmatpush.msra.mxu3 %v133_v10  ;;  %v75_v29 = vld [vmem:[#allocation2 + $0x8] sm:$0xff]  ;;  %v123_v31 = vld [vmem:[#allocation7 + $0x10] sm:$0xff]  ;;  %v122_v32 = vld [vmem:[#allocation7 + $0x8] sm:$0xff] }
  0x19   :  { %101 = vmatpush.msra.mxu0 %v86_v7  ;;  %250 = vmatpush.msra.mxu2 %v86_v7  ;;  %v124_v30 = vld [vmem:[#allocation7 + $0x18] sm:$0xff]  ;;  %v121_v33 = vld [vmem:[#allocation7] sm:$0xff]  ;;  %v283_v34 = vld [vmem:[%s477_s2] ss:$0 sm:$0xff] }
  0x1a   :  { %145 = vmatpush.msra.mxu1 %v132_v12  ;;  %265 = vmatpush.msra.mxu3 %v132_v12  ;;  %v284_v41 = vld [vmem:[%s479_s4] ss:$0 sm:$0xff] }
  0x1b   :  { %102 = vmatpush.msra.mxu0 %v85_v9  ;;  %251 = vmatpush.msra.mxu2 %v85_v9  ;;  %v285_v8 = vld [vmem:[%s480_s5] ss:$0 sm:$0xff]  ;;  %s398_s5 = smov [#allocation8]  }
  0x1c   :  { %146 = vmatpush.msra.mxu1 %v131_v14  ;;  %266 = vmatpush.msra.mxu3 %v131_v14  ;;  %v286_v12 = vld [vmem:[%s481_s6] ss:$0 sm:$0xff]  ;;  %s229_s21 = sshll.u32 %s398_s5, 4  ;;  %s230_s21 = int_to_ptr.vmem [resolvable:$true] %s229_s21 }
  0x1d   :  { %103 = vmatpush.msra.mxu0 %v84_v11  ;;  %252 = vmatpush.msra.mxu2 %v84_v11 }
  0x1e   :  { %147 = vmatpush.msra.mxu1 %v130_v16  ;;  %267 = vmatpush.msra.mxu3 %v130_v16 }
  0x1f   :  { %104 = vmatpush.msra.mxu0 %v83_v13  ;;  %253 = vmatpush.msra.mxu2 %v83_v13 }
  0x20   :  { %148 = vmatpush.msra.mxu1 %v129_v18  ;;  %268 = vmatpush.msra.mxu3 %v129_v18 }
  0x21   :  { %105 = vmatpush.msra.mxu0 %v82_v15  ;;  %254 = vmatpush.msra.mxu2 %v82_v15 }
  0x22   :  { %149 = vmatpush.msra.mxu1 %v128_v20  ;;  %269 = vmatpush.msra.mxu3 %v128_v20 }
  0x23   :  { %106 = vmatpush.msra.mxu0 %v81_v17  ;;  %255 = vmatpush.msra.mxu2 %v81_v17 }
  0x24   :  { %150 = vmatpush.msra.mxu1 %v127_v22  ;;  %270 = vmatpush.msra.mxu3 %v127_v22 }
  0x25   :  { %107 = vmatpush.msra.mxu0 %v80_v19  ;;  %256 = vmatpush.msra.mxu2 %v80_v19 }
  0x26   :  { %151 = vmatpush.msra.mxu1 %v126_v24  ;;  %271 = vmatpush.msra.mxu3 %v126_v24 }
  0x27   :  { %108 = vmatpush.msra.mxu0 %v79_v21  ;;  %257 = vmatpush.msra.mxu2 %v79_v21 }
  0x28   :  { %152 = vmatpush.msra.mxu1 %v125_v26  ;;  %272 = vmatpush.msra.mxu3 %v125_v26 }
  0x29   :  { %109 = vmatpush.msra.mxu0 %v78_v23  ;;  %258 = vmatpush.msra.mxu2 %v78_v23 }
  0x2a   :  { %153 = vmatpush.msra.mxu1 %v124_v30  ;;  %273 = vmatpush.msra.mxu3 %v124_v30 }
  0x2b   :  { %110 = vmatpush.msra.mxu0 %v77_v25  ;;  %259 = vmatpush.msra.mxu2 %v77_v25 }
  0x2c   :  { %154 = vmatpush.msra.mxu1 %v123_v31  ;;  %274 = vmatpush.msra.mxu3 %v123_v31 }
  0x2d   :  { %111 = vmatpush.msra.mxu0 %v76_v27  ;;  %260 = vmatpush.msra.mxu2 %v76_v27 }
  0x2e   :  { %112 = vmatmul.f32.vlgmr.msra.gmra.mxu0 %v74_v28  ;;  %115 = vmatmul.f32.vlgmr.msra.gmra.mxu2 %v75_v29 }
  0x2f   :  { %155 = vmatpush.msra.mxu1 %v122_v32  ;;  %275 = vmatpush.msra.mxu3 %v122_v32 }
  0x31   :  { %156 = vmatpush.msra.mxu1 %v121_v33  ;;  %276 = vmatpush.msra.mxu3 %v121_v33 }
  0xab   :  { %v113_v35 = vpop.f32.mrf.mxu0 }
  0xac   :  { %v114_v36 = vadd.f32 %v283_v34, %v113_v35 }
  0xae   :  { %v119_v37 = vmax.f32 %v114_v36, 0.0 }
  0xb0   :  { %157 = vmatmul.f32.vlgmr.msra.gmra.mxu1 %v119_v37 }
  0xb1   :  { %v116_v38 = vpop.f32.mrf.mxu2 }
  0xb2   :  { %v117_v39 = vadd.f32 %v283_v34, %v116_v38 }
  0xb4   :  { %v120_v40 = vmax.f32 %v117_v39, 0.0 }
  0xb6   :  { %160 = vmatmul.f32.vlgmr.msra.gmra.mxu3 %v120_v40 }
 0x12d   :  { %v158_v42 = vpop.f32.mrf.mxu1 }
 0x12e   :  { %v159_v43 = vadd.f32 %v284_v41, %v158_v42 }
 0x130   :  { %v164_v44 = vadd.f32 %v159_v43, %v74_v28 }
 0x132   :  { %166 = vadd.xlane.f32.xlu0 %v164_v44 }
 0x139   :  { %v161_v45 = vpop.f32.mrf.mxu3 }
 0x13a   :  { %v162_v46 = vadd.f32 %v284_v41, %v161_v45 }
 0x13c   :  { %v165_v47 = vadd.f32 %v162_v46, %v75_v29 }
 0x13e   :  { %168 = vadd.xlane.f32.xlu0 %v165_v47 }
 0x1a5   :  { %v167_v50 = vpop.xlane.xlu0 %166 }
 0x1a6   :  { %v170_v51 = vmul.f32 0.00862069, %v167_v50 }
 0x1a8   :  { %v172_v52 = vsub.f32 %v164_v44, %v170_v51 }
 0x1aa   :  { %v177_v53 = vsel %vm176_vm0, %v172_v52, 0.0 }
 0x1ab   :  { %v179_v54 = vmul.f32 %v177_v53, %v177_v53 }
 0x1ad   :  { %181 = vadd.xlane.f32.xlu1 %v179_v54 }
 0x1b1   :  { %v169_v55 = vpop.xlane.xlu0 %168 }
 0x1b2   :  { %v171_v56 = vmul.f32 0.00862069, %v169_v55 }
 0x1b4   :  { %v173_v57 = vsub.f32 %v165_v47, %v171_v56 }
 0x1b6   :  { %v178_v58 = vsel %vm176_vm0, %v173_v57, 0.0 }
 0x1b7   :  { %v180_v59 = vmul.f32 %v178_v58, %v178_v58 }
 0x1b9   :  { %183 = vadd.xlane.f32.xlu1 %v180_v59 }
 0x220   :  { %v182_v60 = vpop.xlane.xlu1 %181 }
 0x221   :  { %v185_v61 = vmul.f32 0.00862069, %v182_v60 }
 0x223   :  { %v187_v62 = vadd.f32 1e-05, %v185_v61 }
 0x225   :  { %287 = vrsqrt.f32 %v187_v62  ;;  %vm195_vm2 = vweird.f32 %v187_v62 }
 0x22b   :  { %v288_v63 = vpop.eup %287 }
 0x22c   :  { %v190_v0 = vmul.f32 %v288_v63, %v187_v62  ;;  %v184_v1 = vpop.xlane.xlu1 %183  ;;  %vm196_vm1 = vweird.f32 %v288_v63 }
 0x22d   :  { %v186_v2 = vmul.f32 0.00862069, %v184_v1  ;;  %vm197_vm3 = vmor %vm195_vm2, %vm196_vm1 }
 0x22e   :  { %v191_v3 = vmul.f32 %v288_v63, %v190_v0 }
 0x22f   :  { %v188_v4 = vadd.f32 1e-05, %v186_v2 }
 0x230   :  { %v192_v5 = vmul.f32 0.5, %v191_v3 }
 0x231   :  { %289 = vrsqrt.f32 %v188_v4  ;;  %vm205_vm5 = vweird.f32 %v188_v4 }
 0x232   :  { %v193_v6 = vsub.f32 1.5, %v192_v5 }
 0x234   :  { %v194_v7 = vmul.f32 %v288_v63, %v193_v6 }
 0x236   :  { %v198_v9 = vsel %vm197_vm3, %v288_v63, %v194_v7 }
 0x237   :  { %v290_v10 = vpop.eup %289  ;;  %v209_v11 = vmul.f32 %v198_v9, %v172_v52 }
 0x238   :  { %v200_v13 = vmul.f32 %v290_v10, %v188_v4  ;;  %vm206_vm4 = vweird.f32 %v290_v10 }
 0x239   :  { %v215_v14 = vmul.f32 %v285_v8, %v209_v11  ;;  %vm207_vm6 = vmor %vm205_vm5, %vm206_vm4 }
 0x23a   :  { %v201_v15 = vmul.f32 %v290_v10, %v200_v13 }
 0x23b   :  { %v221_v16 = vadd.f32 %v286_v12, %v215_v14 }
 0x23c   :  { %v202_v17 = vmul.f32 0.5, %v201_v15 }
 0x23d   :  { %223 = vst [vmem:[#allocation8] sm:$0xff] %v221_v16 }
 0x23e   :  { %v203_v18 = vsub.f32 1.5, %v202_v17 }
 0x240   :  { %v204_v19 = vmul.f32 %v290_v10, %v203_v18 }
 0x242   :  { %v208_v20 = vsel %vm207_vm6, %v290_v10, %v204_v19 }
 0x243   :  { %v210_v21 = vmul.f32 %v208_v20, %v173_v57 }
 0x245   :  { %v216_v22 = vmul.f32 %v285_v8, %v210_v21 }
 0x247   :  { %v222_v23 = vadd.f32 %v286_v12, %v216_v22 }
 0x249   :  { %224 = vst [vmem:[#allocation8 + $0x8] sm:$0xff] %v222_v23 }
 0x24a   :  { %237 = dma.vmem_to_hbm [thread:$0]  %s230_s21, 256, %s232_s24, [#allocation4], %s394_s9, %s394_s9, %s395_s10  }
 0x24b   :  { %391 = dma.done.wait [#allocation4], 256  }
 0x24c   :  { %392 = vsyncadd [#allocation4], 4294967040 }
 0x24d   :  { %242 = vsyncpa [#allocation3], 1 }
 0x24e   :  { %243 = vsyncpa [#allocation6], 1 }
 0x24f   :  { %244 = vsyncpa [#allocation4], 1 }

</bundles_post_ra>
